<compile_context>
chip_gen: v7x
topology: tpu7x:2x2x1
jax: 0.10.0
libtpu: 0.0.40
codegen_flags: <defaults>
</compile_context>

<pallas_src>
import math

import jax
import jax.numpy as jnp
from jax.experimental import pallas as pl
from jax.experimental.pallas import tpu as pltpu


def _mlp_dec_kernel(z_ref, x_ref, x0_ref, w1z_ref, w1x_ref, w1x0_ref,
                    b1_ref, w2_ref, b2_ref, o_ref):
    """One batch tile: out = relu(concat(z,x,x0) @ W1 + b1) @ W2 + b2.

    Activations arrive in their HBM dtype and are cast to the compute dtype
    (= weights' dtype) in-register, so the wrapper never rewrites them in HBM.
    All matmuls accumulate in f32 on the MXU; bias + ReLU are applied in f32.
    """
    cd = w1z_ref.dtype
    h = jnp.dot(z_ref[...].astype(cd), w1z_ref[...],
                preferred_element_type=jnp.float32)
    h = h + jnp.dot(x_ref[...].astype(cd), w1x_ref[...],
                    preferred_element_type=jnp.float32)
    h = h + jnp.dot(x0_ref[...].astype(cd), w1x0_ref[...],
                    preferred_element_type=jnp.float32)
    h = jnp.maximum(h + b1_ref[...], 0.0)
    out = jnp.dot(h.astype(cd), w2_ref[...],
                  preferred_element_type=jnp.float32)
    o_ref[...] = (out + b2_ref[...]).astype(o_ref.dtype)


def _block_diag(w, r):
    """(a,b) -> (r*a, r*b) block-diagonal with r copies of w (trace-time, tiny)."""
    if r == 1:
        return w
    a, b = w.shape
    eye = jnp.eye(r, dtype=w.dtype)
    return jnp.einsum("rs,ab->rasb", eye, w).reshape(r * a, r * b)


def prepare_mlp_dec(params, z_dim, x_dim, x0_dim, *,
                    compute_dtype=jnp.bfloat16, lane_pack=True):
    """One-time weight preparation (hoisted out of the per-call path).

    Splits W1 by input source (fused concat) and, when lane packing is on,
    expands weights block-diagonally so R consecutive batch rows share one
    lane-dense flat row (kernel output last dim becomes a multiple of 128).
    """
    w1, b1, w2, b2 = params["w1"], params["b1"], params["w2"], params["b2"]
    D = z_dim + x_dim + x0_dim
    H, O = w1.shape[1], w2.shape[1]
    assert w1.shape[0] == D and w2.shape[0] == H
    assert b1.shape[-1] == H and b2.shape[-1] == O

    R = 128 // math.gcd(O, 128) if lane_pack else 1
    if R > 16:   # guard: awkward O would blow up expanded weights / FLOPs ~R^2
        R = 1

    cd = jnp.dtype(compute_dtype)
    w1c = w1.astype(cd)
    prep = {
        "w1z": _block_diag(w1c[:z_dim], R),                    # (R*Z,  R*H)
        "w1x": _block_diag(w1c[z_dim:z_dim + x_dim], R),       # (R*X,  R*H)
        "w1x0": _block_diag(w1c[z_dim + x_dim:], R),           # (R*X0, R*H)
        "w2": _block_diag(w2.astype(cd), R),                   # (R*H,  R*O)
        "b1": jnp.tile(b1.astype(jnp.float32).reshape(1, H), (1, R)),  # (1, R*H)
        "b2": jnp.tile(b2.astype(jnp.float32).reshape(1, O), (1, R)),  # (1, R*O)
    }
    meta = dict(z_dim=z_dim, x_dim=x_dim, x0_dim=x0_dim, hidden=H, out_dim=O,
                R=R, compute_dtype=cd)
    return prep, meta


def _pick_batch_tile(bf, bytes_per_row, resident_bytes, vmem_budget_bytes):
    """Largest batch tile (flat rows) under the VMEM budget; keeps >= 2 grid
    steps for non-trivial batches so both v7x TensorCores get work."""
    avail = max(vmem_budget_bytes - resident_bytes, 0)
    tbf = int(avail // max(bytes_per_row, 1))
    tbf = max(16, min(tbf, 8192))
    tbf = (tbf // 16) * 16
    if bf <= tbf:
        if bf >= 128:                                   # split across 2 cores
            tbf = ((bf + 1) // 2 + 15) // 16 * 16
        else:
            tbf = bf                                    # single full-dim block
    return tbf


def mlp_dec_forward(z, x, x_0, prep, meta, *, out_dtype=None,
                    vmem_budget_bytes=40 << 20):
    """Pallas implementation of MLPDec.forward(z, x, x_0)."""
    Z, X, X0 = meta["z_dim"], meta["x_dim"], meta["x0_dim"]
    H, O, R = meta["hidden"], meta["out_dim"], meta["R"]
    cd = meta["compute_dtype"]
    assert z.shape[1] == Z and x.shape[1] == X and x_0.shape[1] == X0
    B = z.shape[0]
    out_dtype = jnp.dtype(out_dtype) if out_dtype is not None else jnp.dtype(z.dtype)

    # Lane packing: R consecutive batch rows per flat row.  Only the (rare)
    # B % R remainder is padded -- no full-batch pad / dtype rewrite in HBM.
    B_r = ((B + R - 1) // R) * R

    def pack(a, d):
        if B_r != B:
            a = jnp.pad(a, ((0, B_r - B), (0, 0)))
        return a.reshape(B_r // R, R * d)     # free row-major reshape, HBM dtype

    z_f, x_f, x0_f = pack(z, Z), pack(x, X), pack(x_0, X0)
    Bf = B_r // R

    # VMEM accounting: double-buffered activation/output tiles + f32 hidden
    # temp + in-kernel cast copies; resident = expanded weights + biases (x2).
    in_isz = max(jnp.dtype(z.dtype).itemsize, jnp.dtype(x.dtype).itemsize,
                 jnp.dtype(x_0.dtype).itemsize)
    D = Z + X + X0
    bytes_per_row = (2 * R * D * in_isz
                     + 2 * R * O * out_dtype.itemsize
                     + R * H * 4
                     + R * D * cd.itemsize)
    resident = (2 * ((R * D) * (R * H) + (R * H) * (R * O)) * cd.itemsize
                + 2 * (R * H + R * O) * 4)
    TBf = _pick_batch_tile(Bf, bytes_per_row, resident, vmem_budget_bytes)
    grid = (pl.cdiv(Bf, TBf),)          # ragged last block is masked by Pallas
    vmem_limit = int(min(max(resident + TBf * bytes_per_row + (2 << 20), 32 << 20),
                         48 << 20))

    # Executed (MXU) FLOPs incl. the block-diagonal zero blocks; HBM bytes.
    flops = 2 * Bf * R * R * (D * H + H * O)
    bytes_accessed = (B_r * D * in_isz + resident // 2
                      + Bf * R * O * out_dtype.itemsize)
    cost = pl.CostEstimate(flops=flops, transcendentals=0,
                           bytes_accessed=bytes_accessed)

    out_flat = pl.pallas_call(
        _mlp_dec_kernel,
        out_shape=jax.ShapeDtypeStruct((Bf, R * O), out_dtype),
        grid_spec=pltpu.PrefetchScalarGridSpec(
            num_scalar_prefetch=0,
            grid=grid,
            in_specs=[
                pl.BlockSpec((TBf, R * Z), lambda i: (i, 0)),      # z tile
                pl.BlockSpec((TBf, R * X), lambda i: (i, 0)),      # x tile
                pl.BlockSpec((TBf, R * X0), lambda i: (i, 0)),     # x_0 tile
                pl.BlockSpec((R * Z, R * H), lambda i: (0, 0)),    # W1[z]  (resident)
                pl.BlockSpec((R * X, R * H), lambda i: (0, 0)),    # W1[x]  (resident)
                pl.BlockSpec((R * X0, R * H), lambda i: (0, 0)),   # W1[x0] (resident)
                pl.BlockSpec((1, R * H), lambda i: (0, 0)),        # b1
                pl.BlockSpec((R * H, R * O), lambda i: (0, 0)),    # W2     (resident)
                pl.BlockSpec((1, R * O), lambda i: (0, 0)),        # b2
            ],
            out_specs=pl.BlockSpec((TBf, R * O), lambda i: (i, 0)),
        ),
        compiler_params=pltpu.CompilerParams(
            dimension_semantics=("parallel",),
            vmem_limit_bytes=vmem_limit),
        cost_estimate=cost,
    )(z_f, x_f, x0_f, prep["w1z"], prep["w1x"], prep["w1x0"],
      prep["b1"], prep["w2"], prep["b2"])

    # (Bf, R*O) row-major is bit-identical to (B_r, O); drop any pad rows.
    out = out_flat.reshape(B_r, O)
    return out[:B] if B_r != B else out


def init_params(key, in_dim, hidden, out_dim, dtype=jnp.float32):
    """Deterministic synthetic parameters (PyTorch-Linear-like init)."""
    k1, k2, k3, k4 = jax.random.split(key, 4)
    lim1 = 1.0 / (in_dim ** 0.5)
    lim2 = 1.0 / (hidden ** 0.5)
    return {
        "w1": jax.random.uniform(k1, (in_dim, hidden), dtype, -lim1, lim1),
        "b1": jax.random.uniform(k2, (hidden,), dtype, -lim1, lim1),
        "w2": jax.random.uniform(k3, (hidden, out_dim), dtype, -lim2, lim2),
        "b2": jax.random.uniform(k4, (out_dim,), dtype, -lim2, lim2),
    }


def _reference(z, x, x_0, params, compute_dtype):
    """Plain-JAX reference with the same dtype policy as the kernel."""
    cd = compute_dtype
    zx = jnp.concatenate([z, x, x_0], axis=-1).astype(cd)
    h = jnp.dot(zx, params["w1"].astype(cd),
                preferred_element_type=jnp.float32) + params["b1"]
    h = jnp.maximum(h, 0.0).astype(cd)
    return jnp.dot(h, params["w2"].astype(cd),
                   preferred_element_type=jnp.float32) + params["b2"]


if __name__ == "__main__":
    # Small, module-consistent shapes.
    B = 16
    Z_DIM, X_DIM, X0_DIM = 8, 8, 16
    IN_DIM = Z_DIM + X_DIM + X0_DIM   # net_params['in_dim']      == 32
    HIDDEN = 32                       # net_params['hidden_size'] == 32
    OUT_DIM = 16                      # net_params['out_dim']     == 16

    key = jax.random.PRNGKey(0)
    kz, kx, kx0, kp = jax.random.split(key, 4)
    z = jax.random.normal(kz, (B, Z_DIM), jnp.float32)
    x = jax.random.normal(kx, (B, X_DIM), jnp.float32)
    x_0 = jax.random.normal(kx0, (B, X0_DIM), jnp.float32)
    params = init_params(kp, IN_DIM, HIDDEN, OUT_DIM)

    # bf16 compute, default (f32) writeback.  Weights are prepared once and
    # captured as jit constants (hoisted out of the per-call path).
    prep16, meta16 = prepare_mlp_dec(params, Z_DIM, X_DIM, X0_DIM,
                                     compute_dtype=jnp.bfloat16)
    fwd16 = jax.jit(lambda a, b, c: mlp_dec_forward(a, b, c, prep16, meta16))
    out_bf16 = jax.block_until_ready(fwd16(z, x, x_0))
    ref_bf16 = _reference(z, x, x_0, params, jnp.bfloat16)
    assert out_bf16.shape == (B, OUT_DIM)
    assert jnp.allclose(out_bf16, ref_bf16, atol=2e-2, rtol=2e-2), \
        "bf16 kernel mismatch vs reference"

    # bf16 writeback path (halves output HBM traffic).
    fwd16w = jax.jit(lambda a, b, c: mlp_dec_forward(a, b, c, prep16, meta16,
                                                     out_dtype=jnp.bfloat16))
    out_bf16w = jax.block_until_ready(fwd16w(z, x, x_0))
    assert out_bf16w.shape == (B, OUT_DIM) and out_bf16w.dtype == jnp.bfloat16
    assert jnp.allclose(out_bf16w.astype(jnp.float32), ref_bf16,
                        atol=5e-2, rtol=5e-2), "bf16-out kernel mismatch"

    # f32 compute path with the natural-layout (lane_pack=False, v5e-style)
    # fallback as an extra sanity check.
    prep32, meta32 = prepare_mlp_dec(params, Z_DIM, X_DIM, X0_DIM,
                                     compute_dtype=jnp.float32, lane_pack=False)
    fwd32 = jax.jit(lambda a, b, c: mlp_dec_forward(a, b, c, prep32, meta32))
    out_f32 = jax.block_until_ready(fwd32(z, x, x_0))
    ref_f32 = _reference(z, x, x_0, params, jnp.float32)
    assert jnp.allclose(out_f32, ref_f32, atol=2e-2, rtol=2e-2), \
        "f32 kernel mismatch vs reference"

    print("KERNEL_OK")
</pallas_src>

<mosaic_0001>
module attributes {stable_mosaic.version = 11 : i64} {
  func.func @_mlp_dec_kernel(%arg0: i32, %arg1: memref<2x64xf32, #tpu.memory_space<vmem>>, %arg2: memref<2x64xf32, #tpu.memory_space<vmem>>, %arg3: memref<2x128xf32, #tpu.memory_space<vmem>>, %arg4: memref<64x256xbf16, #tpu.memory_space<vmem>>, %arg5: memref<64x256xbf16, #tpu.memory_space<vmem>>, %arg6: memref<128x256xbf16, #tpu.memory_space<vmem>>, %arg7: memref<1x256xf32, #tpu.memory_space<vmem>>, %arg8: memref<256x128xbf16, #tpu.memory_space<vmem>>, %arg9: memref<1x128xf32, #tpu.memory_space<vmem>>, %arg10: memref<2x128xf32, #tpu.memory_space<vmem>>) attributes {dimension_semantics = [#tpu.dimension_semantics<parallel>], iteration_bounds = array<i64: 1>, scalar_prefetch = 0 : i64, scratch_operands = 0 : i64, tpu.core_type = #tpu.core_type<tc>, window_params = [{transform_indices = @transform_0, window_bounds = array<i64: 2, 64>}, {transform_indices = @transform_1, window_bounds = array<i64: 2, 64>}, {transform_indices = @transform_2, window_bounds = array<i64: 2, 128>}, {pipeline_mode = #tpu.pipeline_mode<synchronous>, transform_indices = @transform_3, window_bounds = array<i64: 64, 256>}, {pipeline_mode = #tpu.pipeline_mode<synchronous>, transform_indices = @transform_4, window_bounds = array<i64: 64, 256>}, {pipeline_mode = #tpu.pipeline_mode<synchronous>, transform_indices = @transform_5, window_bounds = array<i64: 128, 256>}, {pipeline_mode = #tpu.pipeline_mode<synchronous>, transform_indices = @transform_6, window_bounds = array<i64: 1, 256>}, {pipeline_mode = #tpu.pipeline_mode<synchronous>, transform_indices = @transform_7, window_bounds = array<i64: 256, 128>}, {pipeline_mode = #tpu.pipeline_mode<synchronous>, transform_indices = @transform_8, window_bounds = array<i64: 1, 128>}, {transform_indices = @transform_9, window_bounds = array<i64: 2, 128>}]} {
    %c0 = arith.constant 0 : index
    %c0_0 = arith.constant 0 : index
    %0 = vector.load %arg1[%c0, %c0_0] : memref<2x64xf32, #tpu.memory_space<vmem>>, vector<2x64xf32>
    %1 = arith.truncf %0 : vector<2x64xf32> to vector<2x64xbf16>
    %c0_1 = arith.constant 0 : index
    %c0_2 = arith.constant 0 : index
    %2 = vector.load %arg4[%c0_1, %c0_2] : memref<64x256xbf16, #tpu.memory_space<vmem>>, vector<64x256xbf16>
    %cst = arith.constant dense<0.000000e+00> : vector<2x256xf32>
    %3 = tpu.matmul %1, %2, %cst {dimension_numbers = #tpu.dot_dimension_numbers<[1], [0], [0], [1], [0, 0, 1, 1], [], []>} : vector<2x64xbf16>, vector<64x256xbf16>, vector<2x256xf32> -> vector<2x256xf32>
    %c0_3 = arith.constant 0 : index
    %c0_4 = arith.constant 0 : index
    %4 = vector.load %arg2[%c0_3, %c0_4] : memref<2x64xf32, #tpu.memory_space<vmem>>, vector<2x64xf32>
    %5 = arith.truncf %4 : vector<2x64xf32> to vector<2x64xbf16>
    %c0_5 = arith.constant 0 : index
    %c0_6 = arith.constant 0 : index
    %6 = vector.load %arg5[%c0_5, %c0_6] : memref<64x256xbf16, #tpu.memory_space<vmem>>, vector<64x256xbf16>
    %cst_7 = arith.constant dense<0.000000e+00> : vector<2x256xf32>
    %7 = tpu.matmul %5, %6, %cst_7 {dimension_numbers = #tpu.dot_dimension_numbers<[1], [0], [0], [1], [0, 0, 1, 1], [], []>} : vector<2x64xbf16>, vector<64x256xbf16>, vector<2x256xf32> -> vector<2x256xf32>
    %8 = arith.addf %3, %7 : vector<2x256xf32>
    %c0_8 = arith.constant 0 : index
    %c0_9 = arith.constant 0 : index
    %9 = vector.load %arg3[%c0_8, %c0_9] : memref<2x128xf32, #tpu.memory_space<vmem>>, vector<2x128xf32>
    %10 = arith.truncf %9 : vector<2x128xf32> to vector<2x128xbf16>
    %c0_10 = arith.constant 0 : index
    %c0_11 = arith.constant 0 : index
    %11 = vector.load %arg6[%c0_10, %c0_11] : memref<128x256xbf16, #tpu.memory_space<vmem>>, vector<128x256xbf16>
    %cst_12 = arith.constant dense<0.000000e+00> : vector<2x256xf32>
    %12 = tpu.matmul %10, %11, %cst_12 {dimension_numbers = #tpu.dot_dimension_numbers<[1], [0], [0], [1], [0, 0, 1, 1], [], []>} : vector<2x128xbf16>, vector<128x256xbf16>, vector<2x256xf32> -> vector<2x256xf32>
    %13 = arith.addf %8, %12 : vector<2x256xf32>
    %c0_13 = arith.constant 0 : index
    %c0_14 = arith.constant 0 : index
    %14 = vector.load %arg7[%c0_13, %c0_14] : memref<1x256xf32, #tpu.memory_space<vmem>>, vector<1x256xf32>
    %15 = vector.broadcast %14 : vector<1x256xf32> to vector<2x256xf32>
    %16 = arith.addf %13, %15 : vector<2x256xf32>
    %cst_15 = arith.constant 0.000000e+00 : f32
    %17 = vector.broadcast %cst_15 : f32 to vector<2x256xf32>
    %18 = arith.maximumf %16, %17 : vector<2x256xf32>
    %19 = arith.truncf %18 : vector<2x256xf32> to vector<2x256xbf16>
    %c0_16 = arith.constant 0 : index
    %c0_17 = arith.constant 0 : index
    %20 = vector.load %arg8[%c0_16, %c0_17] : memref<256x128xbf16, #tpu.memory_space<vmem>>, vector<256x128xbf16>
    %cst_18 = arith.constant dense<0.000000e+00> : vector<2x128xf32>
    %21 = tpu.matmul %19, %20, %cst_18 {dimension_numbers = #tpu.dot_dimension_numbers<[1], [0], [0], [1], [0, 0, 1, 1], [], []>} : vector<2x256xbf16>, vector<256x128xbf16>, vector<2x128xf32> -> vector<2x128xf32>
    %c0_19 = arith.constant 0 : index
    %c0_20 = arith.constant 0 : index
    %22 = vector.load %arg9[%c0_19, %c0_20] : memref<1x128xf32, #tpu.memory_space<vmem>>, vector<1x128xf32>
    %23 = vector.broadcast %22 : vector<1x128xf32> to vector<2x128xf32>
    %24 = arith.addf %21, %23 : vector<2x128xf32>
    %c0_21 = arith.constant 0 : index
    %c0_22 = arith.constant 0 : index
    %25 = vector.load %arg10[%c0_21, %c0_22] : memref<2x128xf32, #tpu.memory_space<vmem>>, vector<2x128xf32>
    tpu.vector_store %arg10[%c0_21, %c0_22], %24 {strides = array<i32>} : memref<2x128xf32, #tpu.memory_space<vmem>>, vector<2x128xf32>,
    return
  }
  func.func @transform_0(%arg0: i32) -> (i32, i32) {
    %c0_i32 = arith.constant 0 : i32
    %c0_i32_0 = arith.constant 0 : i32
    return %arg0, %c0_i32 : i32, i32
  }
  func.func @transform_1(%arg0: i32) -> (i32, i32) {
    %c0_i32 = arith.constant 0 : i32
    %c0_i32_0 = arith.constant 0 : i32
    return %arg0, %c0_i32 : i32, i32
  }
  func.func @transform_2(%arg0: i32) -> (i32, i32) {
    %c0_i32 = arith.constant 0 : i32
    %c0_i32_0 = arith.constant 0 : i32
    return %arg0, %c0_i32 : i32, i32
  }
  func.func @transform_3(%arg0: i32) -> (i32, i32) {
    %c0_i32 = arith.constant 0 : i32
    %c0_i32_0 = arith.constant 0 : i32
    %c0_i32_1 = arith.constant 0 : i32
    return %c0_i32, %c0_i32_0 : i32, i32
  }
  func.func @transform_4(%arg0: i32) -> (i32, i32) {
    %c0_i32 = arith.constant 0 : i32
    %c0_i32_0 = arith.constant 0 : i32
    %c0_i32_1 = arith.constant 0 : i32
    return %c0_i32, %c0_i32_0 : i32, i32
  }
  func.func @transform_5(%arg0: i32) -> (i32, i32) {
    %c0_i32 = arith.constant 0 : i32
    %c0_i32_0 = arith.constant 0 : i32
    %c0_i32_1 = arith.constant 0 : i32
    return %c0_i32, %c0_i32_0 : i32, i32
  }
  func.func @transform_6(%arg0: i32) -> (i32, i32) {
    %c0_i32 = arith.constant 0 : i32
    %c0_i32_0 = arith.constant 0 : i32
    %c0_i32_1 = arith.constant 0 : i32
    return %c0_i32, %c0_i32_0 : i32, i32
  }
  func.func @transform_7(%arg0: i32) -> (i32, i32) {
    %c0_i32 = arith.constant 0 : i32
    %c0_i32_0 = arith.constant 0 : i32
    %c0_i32_1 = arith.constant 0 : i32
    return %c0_i32, %c0_i32_0 : i32, i32
  }
  func.func @transform_8(%arg0: i32) -> (i32, i32) {
    %c0_i32 = arith.constant 0 : i32
    %c0_i32_0 = arith.constant 0 : i32
    %c0_i32_1 = arith.constant 0 : i32
    return %c0_i32, %c0_i32_0 : i32, i32
  }
  func.func @transform_9(%arg0: i32) -> (i32, i32) {
    %c0_i32 = arith.constant 0 : i32
    %c0_i32_0 = arith.constant 0 : i32
    return %arg0, %c0_i32 : i32, i32
  }
}

</mosaic_0001>

<bundles_post_ra>
// kernel: _lambda_.1
= control target key start
LH: loop header
LB: loop body
LE: loop exit
PB: predicated region body
PF: predicated region fallthrough
CT: control target
= control target key end

     0   :  { %v699_v1 = vmov 0   ;;  %vm93_vm0 = vcmask 523264   ;;  %s912_s4 = inlined_call_operand.vmem [shape: bf16[64,256], index: 4, kind: input, shape index: {}]   ;;  %s913_s3 = inlined_call_operand.vmem [shape: bf16[64,256], index: 3, kind: input, shape index: {}]   ;;  %s914_s1 = inlined_call_operand.vmem [shape: f32[2,64], index: 1, kind: input, shape index: {}]   ;;  %s915_s0 = inlined_call_operand.vmem [shape: f32[2,64], index: 0, kind: input, shape index: {}]   ;;  %s916_s5 = inlined_call_operand.vmem [shape: bf16[128,256], index: 5, kind: input, shape index: {}]   ;;  %s917_s2 = inlined_call_operand.vmem [shape: f32[2,128], index: 2, kind: input, shape index: {}]   ;;  %s918_s7 = inlined_call_operand.vmem [shape: bf16[256,128], index: 7, kind: input, shape index: {}]   ;;  %s919_s6 = inlined_call_operand.vmem [shape: f32[1,256], index: 6, kind: input, shape index: {}]   ;;  %s920_s8 = inlined_call_operand.vmem [shape: f32[1,128], index: 8, kind: input, shape index: {}]   ;;  %s921_s9 = inlined_call_operand.vmem [shape: f32[2,128], index: 9, kind: output, shape index: {}]  }
   0x1   :  { %v635_v0 = vld [vmem:[%s912_s4 + $0x4] ss:$8 sps:$4 sm:$0xff]   ;;  %129 = vmatprep.mubr.bf16.mxu0 %v699_v1  ;;  %213 = vmatprep.mubr.bf16.mxu1 %v699_v1  ;;  %v639_v3 = vld [vmem:[%s912_s4] ss:$8 sps:$4 sm:$0xff]   ;;  %v641_v5 = vld [vmem:[%s912_s4 + $0x14] ss:$8 sps:$4 sm:$0xff]  }
   0x2   :  { %v637_v2 = vld [vmem:[%s913_s3 + $0x4] ss:$8 sps:$4 sm:$0xff]   ;;  %97 = vmatprep.subr.bf16.mxu0 %v635_v0  ;;  %v640_v4 = vld [vmem:[%s913_s3] ss:$8 sps:$4 sm:$0xff]   ;;  %v643_v6 = vld [vmem:[%s913_s3 + $0x14] ss:$8 sps:$4 sm:$0xff]  }
   0x3   :  { %181 = vmatprep.subr.bf16.mxu1 %v637_v2  ;;  %98 = vmatpush1.bf16.msra.mxu0 %v639_v3  ;;  %v645_v7 = vld [vmem:[%s912_s4 + $0x10] ss:$8 sps:$4 sm:$0xff]   ;;  %v647_v9 = vld [vmem:[%s912_s4 + $0x24] ss:$8 sps:$4 sm:$0xff]   ;;  %v651_v11 = vld [vmem:[%s912_s4 + $0x20] ss:$8 sps:$4 sm:$0xff]  }
   0x4   :  { %182 = vmatpush1.bf16.msra.mxu1 %v640_v4  ;;  %99 = vmatprep.subr.bf16.mxu0 %v641_v5  ;;  %v646_v8 = vld [vmem:[%s913_s3 + $0x10] ss:$8 sps:$4 sm:$0xff]   ;;  %v649_v10 = vld [vmem:[%s913_s3 + $0x24] ss:$8 sps:$4 sm:$0xff]   ;;  %v652_v12 = vld [vmem:[%s913_s3 + $0x20] ss:$8 sps:$4 sm:$0xff]  }
   0x5   :  { %183 = vmatprep.subr.bf16.mxu1 %v643_v6  ;;  %v653_v13 = vld [vmem:[%s912_s4 + $0x34] ss:$8 sps:$4 sm:$0xff]   ;;  %v657_v15 = vld [vmem:[%s912_s4 + $0x30] ss:$8 sps:$4 sm:$0xff]   ;;  %v43_v17 = vld [vmem:[%s914_s1] sm:$0x3] }
   0x6   :  { %v655_v14 = vld [vmem:[%s913_s3 + $0x34] ss:$8 sps:$4 sm:$0xff]   ;;  %v658_v16 = vld [vmem:[%s913_s3 + $0x30] ss:$8 sps:$4 sm:$0xff]   ;;  %v33_v18 = vld [vmem:[%s915_s0] sm:$0x3]  ;;  %v44_v20 = vpack.c.bf16 %v43_v17, %v43_v17 }
   0x7   :  { %100 = vmatpush1.bf16.msra.mxu0 %v645_v7  ;;  %v661_v19 = vld [vmem:[%s916_s5 + $0x4] ss:$8 sps:$4 sm:$0xff]   ;;  %v34_v21 = vpack.c.bf16 %v33_v18, %v33_v18  ;;  %v659_v22 = vld [vmem:[%s916_s5] ss:$8 sps:$4 sm:$0xff]   ;;  %v664_v23 = vld [vmem:[%s916_s5 + $0x14] ss:$8 sps:$4 sm:$0xff]  }
   0x8   :  { %184 = vmatpush1.bf16.msra.mxu1 %v646_v8  ;;  %101 = vmatprep.subr.bf16.mxu0 %v647_v9  ;;  %v662_v24 = vld [vmem:[%s916_s5 + $0x10] ss:$8 sps:$4 sm:$0xff]   ;;  %v667_v25 = vld [vmem:[%s916_s5 + $0x24] ss:$8 sps:$4 sm:$0xff]   ;;  %v665_v26 = vld [vmem:[%s916_s5 + $0x20] ss:$8 sps:$4 sm:$0xff]  }
   0x9   :  { %185 = vmatprep.subr.bf16.mxu1 %v649_v10  ;;  %v670_v27 = vld [vmem:[%s916_s5 + $0x34] ss:$8 sps:$4 sm:$0xff]   ;;  %v668_v28 = vld [vmem:[%s916_s5 + $0x30] ss:$8 sps:$4 sm:$0xff]   ;;  %v673_v29 = vld [vmem:[%s916_s5 + $0x44] ss:$8 sps:$4 sm:$0xff]  }
   0xa   :  { %v671_v30 = vld [vmem:[%s916_s5 + $0x40] ss:$8 sps:$4 sm:$0xff]   ;;  %v676_v31 = vld [vmem:[%s916_s5 + $0x54] ss:$8 sps:$4 sm:$0xff]   ;;  %v674_v32 = vld [vmem:[%s916_s5 + $0x50] ss:$8 sps:$4 sm:$0xff]  }
   0xb   :  { %102 = vmatpush1.bf16.msra.mxu0 %v651_v11  ;;  %v679_v33 = vld [vmem:[%s916_s5 + $0x64] ss:$8 sps:$4 sm:$0xff]   ;;  %v677_v34 = vld [vmem:[%s916_s5 + $0x60] ss:$8 sps:$4 sm:$0xff]   ;;  %v682_v35 = vld [vmem:[%s916_s5 + $0x74] ss:$8 sps:$4 sm:$0xff]  }
   0xc   :  { %186 = vmatpush1.bf16.msra.mxu1 %v652_v12  ;;  %103 = vmatprep.subr.bf16.mxu0 %v653_v13  ;;  %v680_v36 = vld [vmem:[%s916_s5 + $0x70] ss:$8 sps:$4 sm:$0xff]   ;;  %v222_v37 = vld [vmem:[%s917_s2] sm:$0x3]  ;;  %v685_v41 = vld [vmem:[%s918_s7 + $0x48] sm:$0xff]  }
   0xd   :  { %187 = vmatprep.subr.bf16.mxu1 %v655_v14  ;;  %v223_v38 = vpack.c.bf16 %v222_v37, %v222_v37  ;;  %v683_v39 = vld [vmem:[%s918_s7 + $0x40] sm:$0xff]   ;;  %v686_v42 = vld [vmem:[%s918_s7 + $0x8] sm:$0xff]   ;;  %v687_v43 = vld [vmem:[%s918_s7 + $0x50] sm:$0xff]  }
   0xe   :  { %v684_v40 = vld [vmem:[%s918_s7] sm:$0xff]   ;;  %v688_v44 = vld [vmem:[%s918_s7 + $0x10] sm:$0xff]   ;;  %v689_v45 = vld [vmem:[%s918_s7 + $0x58] sm:$0xff]  }
   0xf   :  { %104 = vmatpush1.bf16.msra.mxu0 %v657_v15  ;;  %v690_v46 = vld [vmem:[%s918_s7 + $0x18] sm:$0xff]   ;;  %v691_v47 = vld [vmem:[%s918_s7 + $0x60] sm:$0xff]   ;;  %v693_v49 = vld [vmem:[%s918_s7 + $0x68] sm:$0xff]  }
  0x10   :  { %188 = vmatpush1.bf16.msra.mxu1 %v658_v16  ;;  %320 = vmatprep.subr.bf16.mxu0 %v661_v19  ;;  %v692_v48 = vld [vmem:[%s918_s7 + $0x20] sm:$0xff]   ;;  %v694_v50 = vld [vmem:[%s918_s7 + $0x28] sm:$0xff]   ;;  %v695_v51 = vld [vmem:[%s918_s7 + $0x70] sm:$0xff]  }
  0x11   :  { %612 = vmatprep.subr.bf16.mxu1 %v683_v39  ;;  %v696_v52 = vld [vmem:[%s918_s7 + $0x30] sm:$0xff]   ;;  %v697_v53 = vld [vmem:[%s918_s7 + $0x78] sm:$0xff]   ;;  %v363_v4 = vld [vmem:[%s919_s6] sm:$0x3] }
  0x12   :  { %569 = vmatmul.mubr.msk.bf16.vlgmr.msra.gmra.mrb[0].mxu0 %vm93_vm0, %v44_v20  ;;  %v698_v54 = vld [vmem:[%s918_s7 + $0x38] sm:$0xff]  }
  0x13   :  { %578 = vmatmul.mubr.msk.bf16.vlgmr.msra.gmra.mrb[0].mxu1 %vm93_vm0, %v34_v21  ;;  %321 = vmatpush1.bf16.msra.mxu0 %v659_v22  ;;  %v595_v21 = vld [vmem:[%s920_s8] ss:$0 sm:$0xff] }
  0x14   :  { %352 = vmatprep.mubr.bf16.mxu0 %v699_v1  ;;  %322 = vmatprep.subr.bf16.mxu0 %v664_v23  ;;  %v365_v1 = vlaneseq }
  0x15   :  { %613 = vmatpush3.bf16.msra.mxu1 %v684_v40 }
  0x16   :  { %614 = vmatprep.subr.bf16.mxu1 %v685_v41  ;;  %v366_v2 = vshrl.u32 %v365_v1, 7 }
  0x17   :  { %323 = vmatpush1.bf16.msra.mxu0 %v662_v24 }
  0x18   :  { %324 = vmatprep.subr.bf16.mxu0 %v667_v25  ;;  %v367_v3 = vsub.s32 0, %v366_v2  ;;  %v371_v5 = vsub.s32 1, %v366_v2 }
  0x19   :  { %615 = vmatpush3.bf16.msra.mxu1 %v686_v42 }
  0x1a   :  { %616 = vmatprep.subr.bf16.mxu1 %v687_v43  ;;  %v368_v6 = vrot.slane %v363_v4, %v367_v3  ;;  %v372_v8 = vrot.slane %v363_v4, %v371_v5 }
  0x1b   :  { %325 = vmatpush1.bf16.msra.mxu0 %v665_v26 }
  0x1c   :  { %326 = vmatprep.subr.bf16.mxu0 %v670_v27 }
  0x1d   :  { %617 = vmatpush3.bf16.msra.mxu1 %v688_v44 }
  0x1e   :  { %618 = vmatprep.subr.bf16.mxu1 %v689_v45 }
  0x1f   :  { %327 = vmatpush1.bf16.msra.mxu0 %v668_v28 }
  0x20   :  { %328 = vmatprep.subr.bf16.mxu0 %v673_v29 }
  0x21   :  { %619 = vmatpush3.bf16.msra.mxu1 %v690_v46 }
  0x22   :  { %620 = vmatprep.subr.bf16.mxu1 %v691_v47 }
  0x23   :  { %329 = vmatpush1.bf16.msra.mxu0 %v671_v30 }
  0x24   :  { %330 = vmatprep.subr.bf16.mxu0 %v676_v31 }
  0x25   :  { %621 = vmatpush3.bf16.msra.mxu1 %v692_v48 }
  0x26   :  { %622 = vmatprep.subr.bf16.mxu1 %v693_v49 }
  0x27   :  { %331 = vmatpush1.bf16.msra.mxu0 %v674_v32 }
  0x28   :  { %332 = vmatprep.subr.bf16.mxu0 %v679_v33 }
  0x29   :  { %623 = vmatpush3.bf16.msra.mxu1 %v694_v50 }
  0x2a   :  { %624 = vmatprep.subr.bf16.mxu1 %v695_v51 }
  0x2b   :  { %333 = vmatpush1.bf16.msra.mxu0 %v677_v34 }
  0x2c   :  { %334 = vmatprep.subr.bf16.mxu0 %v682_v35 }
  0x2d   :  { %625 = vmatpush3.bf16.msra.mxu1 %v696_v52 }
  0x2e   :  { %626 = vmatprep.subr.bf16.mxu1 %v697_v53 }
  0x2f   :  { %335 = vmatpush1.bf16.msra.mxu0 %v680_v36 }
  0x31   :  { %627 = vmatpush3.bf16.msra.mxu1 %v698_v54 }
  0x32   :  { %353 = vmatmul.mubr.bf16.vlgmr.msra.gmra.mrb[4].mxu0 %v223_v38 }
  0xe5   :  { %v131_v55 = vpop.f32.mrb[0].mxu0 }
  0xe6   :  { %v215_v56 = vpop.f32.mrb[0].mxu1  ;;  %v133_v58 = vpop.f32.mrb[1].mxu0 }
  0xe7   :  { %v216_v57 = vadd.f32 %v215_v56, %v131_v55  ;;  %v217_v59 = vpop.f32.mrb[1].mxu1  ;;  %v135_v61 = vpop.f32.mrb[2].mxu0 }
  0xe8   :  { %v218_v60 = vadd.f32 %v217_v59, %v133_v58  ;;  %v219_v62 = vpop.f32.mrb[2].mxu1  ;;  %v136_v63 = vpop.f32.mrb[3].mxu0 }
  0xe9   :  { %v220_v0 = vpop.f32.mrb[3].mxu1 }
 0x105   :  { %v354_v7 = vpop.f32.mrb[4].mxu0 }
 0x106   :  { %v361_v9 = vadd.f32 %v354_v7, %v216_v57  ;;  %v356_v10 = vpop.f32.mrb[5].mxu0 }
 0x107   :  { %v362_v11 = vadd.f32 %v356_v10, %v218_v60  ;;  %v358_v12 = vpop.f32.mrb[6].mxu0 }
 0x108   :  { %v375_v13 = vadd.f32 %v368_v6, %v361_v9  ;;  %v359_v14 = vpop.f32.mrb[7].mxu0 }
 0x109   :  { %v376_v15 = vadd.f32 %v372_v8, %v362_v11 }
 0x10a   :  { %v377_v16 = vmax.f32 %v375_v13, 0.0 }
 0x10b   :  { %v378_v17 = vmax.f32 %v376_v15, 0.0 }
 0x10c   :  { %v379_v19 = vpack.c.bf16 %v377_v16, %v377_v16 }
 0x10d   :  { %v380_v18 = vpack.c.bf16 %v378_v17, %v378_v17 }
 0x10f   :  { %548 = vmatprep.mubr.bf16.mxu1 %v380_v18 }
 0x110   :  { %549 = vmatmul.mubr.bf16.vlgmr.msra.gmra.mrb[4].mxu1 %v379_v19 }
 0x1e3   :  { %v628_v20 = vpop.f32.mrb[4].mxu1 }
 0x1e4   :  { %v629_v22 = vpop.f32.mrb[5].mxu1 }
 0x1e5   :  { %v630_v23 = vadd.f32 %v629_v22, %v628_v20  ;;  %v631_v24 = vpop.f32.mrb[6].mxu1 }
 0x1e6   :  { %v632_v25 = vpop.f32.mrb[7].mxu1 }
 0x1e7   :  { %v551_v26 = vadd.f32 %v630_v23, %v595_v21 }
 0x1e9   :  { %556 = vst [vmem:[%s921_s9] sm:$0x3] %v551_v26 }

</bundles_post_ra>
